<compile_context>
chip_gen: v5e
topology: v5e:2x2
jax: 0.10.0
libtpu: 0.0.40
codegen_flags: <defaults>
</compile_context>

<pallas_src>
import functools

import jax
import jax.numpy as jnp
from jax.experimental import pallas as pl
from jax.experimental.pallas import tpu as pltpu

LANE = 128
SUBLANE = 8
NCORES = 2  # v7x has 2 TensorCores; on v5e/v6e this is just 2 sequential chunks.


def _round_up(x, m):
    return ((x + m - 1) // m) * m


def _min_sublane(dtype):
    # Minimum second-to-last tile dim: 8 for 4-byte, 16 for 2-byte, 32 for 1-byte dtypes.
    return max(SUBLANE, 32 // jnp.dtype(dtype).itemsize)


def _scaled_mse_kernel(p_ref, t_ref, s_ref, acc_ref, *,
                       total_rows, tile_rows, steps, last_blk):
    """Accumulates per-lane partials into acc_ref of shape (3, 8, 128):
       acc[0] = sum of weights where scale > 0
       acc[1] = count of elements where scale > 0
       acc[2] = sum of |scale|  (nonzero-scale detector)
    """
    c = pl.program_id(0)   # parallel chunk (TensorCore on v7x)
    i = pl.program_id(1)   # sequential step within the chunk

    @pl.when(i == 0)
    def _init():
        acc_ref[...] = jnp.zeros_like(acc_ref)

    p = p_ref[...].astype(jnp.float32)
    t = t_ref[...].astype(jnp.float32)
    s = s_ref[...].astype(jnp.float32)

    diff = p - t
    w = s * diff * diff
    s_abs = jnp.abs(s)

    def fold(x):
        # (tile_rows, 128) -> (8, 128): sublane-group sum == pure VPU vreg adds.
        return jnp.sum(x.reshape(tile_rows // SUBLANE, SUBLANE, LANE), axis=0)

    # Logical (unclamped) block this step is responsible for.
    blk = c * steps + i
    row0 = blk * tile_rows
    # Fast path: block fully in-bounds and not a clamped duplicate -> no row mask.
    is_full = jnp.logical_and(blk <= last_blk, row0 + tile_rows <= total_rows)

    @pl.when(is_full)
    def _fast():
        pos = s > 0.0
        acc_ref[0] += fold(jnp.where(pos, w, 0.0))
        acc_ref[1] += fold(pos.astype(jnp.float32))
        acc_ref[2] += fold(s_abs)

    @pl.when(jnp.logical_not(is_full))
    def _masked():
        # Tail / clamped-duplicate block: mask out rows past the end of the array.
        row_ids = row0 + jax.lax.broadcasted_iota(jnp.int32, (tile_rows, LANE), 0)
        valid = row_ids < total_rows
        pos = jnp.logical_and(valid, s > 0.0)
        # Keep the selects (not multiply-by-mask): OOB rows may hold NaN/Inf garbage.
        acc_ref[0] += fold(jnp.where(pos, w, 0.0))
        acc_ref[1] += fold(pos.astype(jnp.float32))
        acc_ref[2] += fold(jnp.where(valid, s_abs, 0.0))


@functools.partial(jax.jit, static_argnames=("tile_rows",))
def scaled_mse_loss(pred, target, scale, *, tile_rows=2048):
    """Pallas implementation of ScaledMSELoss.forward."""
    assert pred.shape == target.shape == scale.shape
    n = pred.size

    pred_f = pred.reshape(-1)
    target_f = target.reshape(-1)
    scale_f = scale.reshape(-1)

    n_main = (n // LANE) * LANE  # lane-aligned prefix handled by the kernel

    # Ragged (<128 elem) tail: tiny plain-JAX reduction, so the large tensors are
    # never padded/copied in the common lane-aligned case.
    if n_main < n:
        tp = pred_f[n_main:].astype(jnp.float32)
        tt = target_f[n_main:].astype(jnp.float32)
        ts = scale_f[n_main:].astype(jnp.float32)
        td = tp - tt
        tw = ts * td * td
        tpos = ts > 0.0
        tail_sum = jnp.sum(jnp.where(tpos, tw, 0.0))
        tail_cnt = jnp.sum(tpos.astype(jnp.float32))
        tail_abs = jnp.sum(jnp.abs(ts))
    else:
        tail_sum = tail_cnt = tail_abs = jnp.float32(0.0)

    if n_main == 0:
        # Whole input fits in the tail; nothing for the kernel to do.
        sum_pos, cnt_pos, sum_abs = tail_sum, tail_cnt, tail_abs
    else:
        p2 = pred_f[:n_main].reshape(-1, LANE)    # free reshape when n % 128 == 0
        t2 = target_f[:n_main].reshape(-1, LANE)
        s2 = scale_f[:n_main].reshape(-1, LANE)
        rows = n_main // LANE

        sub = max(_min_sublane(pred.dtype), _min_sublane(target.dtype),
                  _min_sublane(scale.dtype))
        tr = min(tile_rows, _round_up(rows, sub))
        tr = _round_up(tr, sub)

        num_blocks = pl.cdiv(rows, tr)
        chunks = min(NCORES, num_blocks)   # never DMA a fully-masked duplicate block
        steps = pl.cdiv(num_blocks, chunks)
        last_blk = num_blocks - 1

        def in_map(c, i):
            # Clamp so the DMA never targets a nonexistent block; the kernel masks
            # duplicated / partial rows via the row-id mask.
            return (jnp.minimum(c * steps + i, last_blk), 0)

        kernel = functools.partial(
            _scaled_mse_kernel, total_rows=rows, tile_rows=tr,
            steps=steps, last_blk=last_blk)

        in_spec = pl.BlockSpec((tr, LANE), in_map)

        bytes_in = n_main * (jnp.dtype(pred.dtype).itemsize
                             + jnp.dtype(target.dtype).itemsize
                             + jnp.dtype(scale.dtype).itemsize)

        # TODO(synk): on v7x, evaluate pltpu.CORE_PARALLEL on the chunk axis (or
        # pl.core_map over create_tensorcore_mesh) and confirm in the trace that both
        # TensorCores issue DMAs; plain "parallel" is kept here for portability.
        partials = pl.pallas_call(
            kernel,
            out_shape=jax.ShapeDtypeStruct((chunks * 3, SUBLANE, LANE), jnp.float32),
            grid_spec=pltpu.PrefetchScalarGridSpec(
                num_scalar_prefetch=0,
                grid=(chunks, steps),
                in_specs=[in_spec, in_spec, in_spec],
                out_specs=pl.BlockSpec((3, SUBLANE, LANE), lambda c, i: (c, 0, 0)),
            ),
            compiler_params=pltpu.CompilerParams(
                dimension_semantics=("parallel", "arbitrary")),
            cost_estimate=pl.CostEstimate(
                flops=10 * n_main,
                transcendentals=0,
                bytes_accessed=bytes_in + chunks * 3 * SUBLANE * LANE * 4),
        )(p2, t2, s2)

        totals = partials.reshape(chunks, 3, SUBLANE * LANE).sum(axis=(0, 2))
        sum_pos = totals[0] + tail_sum
        cnt_pos = totals[1] + tail_cnt
        sum_abs = totals[2] + tail_abs

    # Branch selection:
    #  - some scale != 0 : mean over scale>0 elements (0/0 -> NaN if none are >0,
    #    matching torch.mean of an empty masked_select).
    #  - all scale == 0  : mean(weights) == 0 for finite pred/target (weights all 0).
    #    (Semantic corner: PyTorch would give NaN here if pred/target contain Inf/NaN.)
    return jnp.where(sum_abs > 0.0, sum_pos / cnt_pos, jnp.float32(0.0))


def _reference_loss(pred, target, scale):
    """Pure-JAX reference mirroring the PyTorch module."""
    pred = pred.astype(jnp.float32)
    target = target.astype(jnp.float32)
    scale = scale.astype(jnp.float32)
    w = scale * (pred - target) ** 2
    has_nz = jnp.any(scale != 0.0)
    pos = scale > 0.0
    masked_mean = jnp.sum(jnp.where(pos, w, 0.0)) / jnp.sum(pos.astype(jnp.float32))
    full_mean = jnp.mean(w)
    return jnp.where(has_nz, masked_mean, full_mean)


if __name__ == "__main__":
    key = jax.random.PRNGKey(0)
    k1, k2, k3 = jax.random.split(key, 3)

    # Small affinity-like volume: batch=2, channels=4, spatial=16x16 (NCHW).
    shape = (2, 4, 16, 16)
    pred = jax.random.normal(k1, shape, dtype=jnp.float32)
    target = jax.random.normal(k2, shape, dtype=jnp.float32)
    scale = jnp.where(jax.random.uniform(k3, shape) > 0.3,
                      jnp.float32(1.0), jnp.float32(0.0))

    loss = jax.block_until_ready(scaled_mse_loss(pred, target, scale))
    ref = jax.block_until_ready(_reference_loss(pred, target, scale))
    assert jnp.allclose(loss, ref, rtol=1e-5, atol=1e-6), (loss, ref)

    # All-zero-scale branch (mean of all-zero weights == 0).
    zero_scale = jnp.zeros(shape, jnp.float32)
    loss0 = jax.block_until_ready(scaled_mse_loss(pred, target, zero_scale))
    ref0 = jax.block_until_ready(_reference_loss(pred, target, zero_scale))
    assert jnp.allclose(loss0, ref0, rtol=1e-5, atol=1e-6), (loss0, ref0)

    # Ragged size (not a multiple of 128) exercises the JAX-tail + partial-block path.
    shape2 = (3, 3, 7, 5)
    k4, k5, k6 = jax.random.split(jax.random.PRNGKey(1), 3)
    pred2 = jax.random.normal(k4, shape2, dtype=jnp.float32)
    target2 = jax.random.normal(k5, shape2, dtype=jnp.float32)
    scale2 = jnp.where(jax.random.uniform(k6, shape2) > 0.5,
                       jnp.float32(2.0), jnp.float32(0.0))
    loss2 = jax.block_until_ready(scaled_mse_loss(pred2, target2, scale2))
    ref2 = jax.block_until_ready(_reference_loss(pred2, target2, scale2))
    assert jnp.allclose(loss2, ref2, rtol=1e-5, atol=1e-6), (loss2, ref2)

    # bf16 inputs (halves HBM traffic; upcast happens in-kernel, tile rounded to 16).
    pred3 = pred.astype(jnp.bfloat16)
    target3 = target.astype(jnp.bfloat16)
    scale3 = scale.astype(jnp.bfloat16)
    loss3 = jax.block_until_ready(scaled_mse_loss(pred3, target3, scale3))
    ref3 = jax.block_until_ready(_reference_loss(pred3, target3, scale3))
    assert jnp.allclose(loss3, ref3, rtol=2e-2, atol=1e-3), (loss3, ref3)

    print("KERNEL_OK")
</pallas_src>

<mosaic_0001>
module attributes {stable_mosaic.version = 11 : i64} {
  func.func @_scaled_mse_kernel(%arg0: i32, %arg1: i32, %arg2: memref<16x128xf32, #tpu.memory_space<vmem>>, %arg3: memref<16x128xf32, #tpu.memory_space<vmem>>, %arg4: memref<16x128xf32, #tpu.memory_space<vmem>>, %arg5: memref<3x8x128xf32, #tpu.memory_space<vmem>>) attributes {dimension_semantics = [#tpu.dimension_semantics<parallel>, #tpu.dimension_semantics<arbitrary>], iteration_bounds = array<i64: 1, 1>, scalar_prefetch = 0 : i64, scratch_operands = 0 : i64, tpu.core_type = #tpu.core_type<tc>, window_params = [{transform_indices = @transform_0, window_bounds = array<i64: 16, 128>}, {transform_indices = @transform_1, window_bounds = array<i64: 16, 128>}, {transform_indices = @transform_2, window_bounds = array<i64: 16, 128>}, {transform_indices = @transform_3, window_bounds = array<i64: 3, 8, 128>}]} {
    %c0_i32 = arith.constant 0 : i32
    %0 = arith.cmpi eq, %arg1, %c0_i32 : i32
    %1 = arith.extui %0 : i1 to i32
    %c0_i32_0 = arith.constant 0 : i32
    %2 = arith.cmpi ne, %1, %c0_i32_0 : i32
    scf.if %2 {
      %cst = arith.constant 0.000000e+00 : f32
      %22 = vector.broadcast %cst : f32 to vector<3x8x128xf32>
      %c0_11 = arith.constant 0 : index
      %c0_12 = arith.constant 0 : index
      %c0_13 = arith.constant 0 : index
      %23 = vector.load %arg5[%c0_11, %c0_12, %c0_13] : memref<3x8x128xf32, #tpu.memory_space<vmem>>, vector<3x8x128xf32>
      tpu.vector_store %arg5[%c0_11, %c0_12, %c0_13], %22 {strides = array<i32>} : memref<3x8x128xf32, #tpu.memory_space<vmem>>, vector<3x8x128xf32>,
    } else {
    }
    %c0 = arith.constant 0 : index
    %c0_1 = arith.constant 0 : index
    %3 = vector.load %arg2[%c0, %c0_1] : memref<16x128xf32, #tpu.memory_space<vmem>>, vector<16x128xf32>
    %c0_2 = arith.constant 0 : index
    %c0_3 = arith.constant 0 : index
    %4 = vector.load %arg3[%c0_2, %c0_3] : memref<16x128xf32, #tpu.memory_space<vmem>>, vector<16x128xf32>
    %c0_4 = arith.constant 0 : index
    %c0_5 = arith.constant 0 : index
    %5 = vector.load %arg4[%c0_4, %c0_5] : memref<16x128xf32, #tpu.memory_space<vmem>>, vector<16x128xf32>
    %6 = arith.subf %3, %4 : vector<16x128xf32>
    %7 = arith.mulf %5, %6 : vector<16x128xf32>
    %8 = arith.mulf %7, %6 : vector<16x128xf32>
    %9 = math.absf %5 : vector<16x128xf32>
    %c1_i32 = arith.constant 1 : i32
    %10 = arith.muli %arg0, %c1_i32 : i32
    %11 = arith.addi %10, %arg1 : i32
    %c16_i32 = arith.constant 16 : i32
    %12 = arith.muli %11, %c16_i32 : i32
    %c0_i32_6 = arith.constant 0 : i32
    %13 = arith.cmpi sle, %11, %c0_i32_6 : i32
    %c16_i32_7 = arith.constant 16 : i32
    %14 = arith.addi %12, %c16_i32_7 : i32
    %c16_i32_8 = arith.constant 16 : i32
    %15 = arith.cmpi sle, %14, %c16_i32_8 : i32
    %16 = arith.andi %13, %15 : i1
    %17 = arith.extui %16 : i1 to i32
    %c0_i32_9 = arith.constant 0 : i32
    %18 = arith.cmpi ne, %17, %c0_i32_9 : i32
    scf.if %18 {
      %cst = arith.constant 0.000000e+00 : f32
      %22 = vector.broadcast %cst : f32 to vector<16x128xf32>
      %23 = arith.cmpf ogt, %5, %22 : vector<16x128xf32>
      %c0_11 = arith.constant 0 : index
      %c0_12 = arith.constant 0 : index
      %c0_13 = arith.constant 0 : index
      %24 = vector.load %arg5[%c0_11, %c0_12, %c0_13] : memref<3x8x128xf32, #tpu.memory_space<vmem>>, vector<1x8x128xf32>
      %25 = vector.shape_cast %24 : vector<1x8x128xf32> to vector<8x128xf32>
      %cst_14 = arith.constant 0.000000e+00 : f32
      %26 = vector.broadcast %cst_14 : f32 to vector<16x128xf32>
      %27 = arith.select %23, %8, %26 : vector<16x128xi1>, vector<16x128xf32>
      %28 = vector.shape_cast %27 : vector<16x128xf32> to vector<2x8x128xf32>
      %cst_15 = arith.constant dense<0.000000e+00> : vector<8x128xf32>
      %29 = vector.multi_reduction <add>, %28, %cst_15 [0] : vector<2x8x128xf32> to vector<8x128xf32>
      %30 = arith.addf %25, %29 : vector<8x128xf32>
      %c0_16 = arith.constant 0 : index
      %c0_17 = arith.constant 0 : index
      %c0_18 = arith.constant 0 : index
      %31 = vector.load %arg5[%c0_16, %c0_17, %c0_18] : memref<3x8x128xf32, #tpu.memory_space<vmem>>, vector<1x8x128xf32>
      %32 = vector.shape_cast %31 : vector<1x8x128xf32> to vector<8x128xf32>
      %33 = vector.shape_cast %30 : vector<8x128xf32> to vector<1x8x128xf32>
      tpu.vector_store %arg5[%c0_16, %c0_17, %c0_18], %33 {strides = array<i32>} : memref<3x8x128xf32, #tpu.memory_space<vmem>>, vector<1x8x128xf32>,
      %c1 = arith.constant 1 : index
      %c0_19 = arith.constant 0 : index
      %c0_20 = arith.constant 0 : index
      %34 = vector.load %arg5[%c1, %c0_19, %c0_20] : memref<3x8x128xf32, #tpu.memory_space<vmem>>, vector<1x8x128xf32>
      %35 = vector.shape_cast %34 : vector<1x8x128xf32> to vector<8x128xf32>
      %36 = arith.extui %23 : vector<16x128xi1> to vector<16x128xi32>
      %37 = arith.sitofp %36 : vector<16x128xi32> to vector<16x128xf32>
      %38 = vector.shape_cast %37 : vector<16x128xf32> to vector<2x8x128xf32>
      %cst_21 = arith.constant dense<0.000000e+00> : vector<8x128xf32>
      %39 = vector.multi_reduction <add>, %38, %cst_21 [0] : vector<2x8x128xf32> to vector<8x128xf32>
      %40 = arith.addf %35, %39 : vector<8x128xf32>
      %c1_22 = arith.constant 1 : index
      %c0_23 = arith.constant 0 : index
      %c0_24 = arith.constant 0 : index
      %41 = vector.load %arg5[%c1_22, %c0_23, %c0_24] : memref<3x8x128xf32, #tpu.memory_space<vmem>>, vector<1x8x128xf32>
      %42 = vector.shape_cast %41 : vector<1x8x128xf32> to vector<8x128xf32>
      %43 = vector.shape_cast %40 : vector<8x128xf32> to vector<1x8x128xf32>
      tpu.vector_store %arg5[%c1_22, %c0_23, %c0_24], %43 {strides = array<i32>} : memref<3x8x128xf32, #tpu.memory_space<vmem>>, vector<1x8x128xf32>,
      %c2 = arith.constant 2 : index
      %c0_25 = arith.constant 0 : index
      %c0_26 = arith.constant 0 : index
      %44 = vector.load %arg5[%c2, %c0_25, %c0_26] : memref<3x8x128xf32, #tpu.memory_space<vmem>>, vector<1x8x128xf32>
      %45 = vector.shape_cast %44 : vector<1x8x128xf32> to vector<8x128xf32>
      %46 = vector.shape_cast %9 : vector<16x128xf32> to vector<2x8x128xf32>
      %cst_27 = arith.constant dense<0.000000e+00> : vector<8x128xf32>
      %47 = vector.multi_reduction <add>, %46, %cst_27 [0] : vector<2x8x128xf32> to vector<8x128xf32>
      %48 = arith.addf %45, %47 : vector<8x128xf32>
      %c2_28 = arith.constant 2 : index
      %c0_29 = arith.constant 0 : index
      %c0_30 = arith.constant 0 : index
      %49 = vector.load %arg5[%c2_28, %c0_29, %c0_30] : memref<3x8x128xf32, #tpu.memory_space<vmem>>, vector<1x8x128xf32>
      %50 = vector.shape_cast %49 : vector<1x8x128xf32> to vector<8x128xf32>
      %51 = vector.shape_cast %48 : vector<8x128xf32> to vector<1x8x128xf32>
      tpu.vector_store %arg5[%c2_28, %c0_29, %c0_30], %51 {strides = array<i32>} : memref<3x8x128xf32, #tpu.memory_space<vmem>>, vector<1x8x128xf32>,
    } else {
    }
    %true = arith.constant true
    %19 = arith.xori %16, %true : i1
    %20 = arith.extui %19 : i1 to i32
    %c0_i32_10 = arith.constant 0 : i32
    %21 = arith.cmpi ne, %20, %c0_i32_10 : i32
    scf.if %21 {
      %22 = tpu.iota {dimensions = array<i32: 0>} : vector<16x128xi32>
      %23 = vector.broadcast %12 : i32 to vector<16x128xi32>
      %24 = arith.addi %23, %22 : vector<16x128xi32>
      %c16_i32_11 = arith.constant 16 : i32
      %25 = vector.broadcast %c16_i32_11 : i32 to vector<16x128xi32>
      %26 = arith.cmpi slt, %24, %25 : vector<16x128xi32>
      %cst = arith.constant 0.000000e+00 : f32
      %27 = vector.broadcast %cst : f32 to vector<16x128xf32>
      %28 = arith.cmpf ogt, %5, %27 : vector<16x128xf32>
      %29 = arith.andi %26, %28 : vector<16x128xi1>
      %c0_12 = arith.constant 0 : index
      %c0_13 = arith.constant 0 : index
      %c0_14 = arith.constant 0 : index
      %30 = vector.load %arg5[%c0_12, %c0_13, %c0_14] : memref<3x8x128xf32, #tpu.memory_space<vmem>>, vector<1x8x128xf32>
      %31 = vector.shape_cast %30 : vector<1x8x128xf32> to vector<8x128xf32>
      %cst_15 = arith.constant 0.000000e+00 : f32
      %32 = vector.broadcast %cst_15 : f32 to vector<16x128xf32>
      %33 = arith.select %29, %8, %32 : vector<16x128xi1>, vector<16x128xf32>
      %34 = vector.shape_cast %33 : vector<16x128xf32> to vector<2x8x128xf32>
      %cst_16 = arith.constant dense<0.000000e+00> : vector<8x128xf32>
      %35 = vector.multi_reduction <add>, %34, %cst_16 [0] : vector<2x8x128xf32> to vector<8x128xf32>
      %36 = arith.addf %31, %35 : vector<8x128xf32>
      %c0_17 = arith.constant 0 : index
      %c0_18 = arith.constant 0 : index
      %c0_19 = arith.constant 0 : index
      %37 = vector.load %arg5[%c0_17, %c0_18, %c0_19] : memref<3x8x128xf32, #tpu.memory_space<vmem>>, vector<1x8x128xf32>
      %38 = vector.shape_cast %37 : vector<1x8x128xf32> to vector<8x128xf32>
      %39 = vector.shape_cast %36 : vector<8x128xf32> to vector<1x8x128xf32>
      tpu.vector_store %arg5[%c0_17, %c0_18, %c0_19], %39 {strides = array<i32>} : memref<3x8x128xf32, #tpu.memory_space<vmem>>, vector<1x8x128xf32>,
      %c1 = arith.constant 1 : index
      %c0_20 = arith.constant 0 : index
      %c0_21 = arith.constant 0 : index
      %40 = vector.load %arg5[%c1, %c0_20, %c0_21] : memref<3x8x128xf32, #tpu.memory_space<vmem>>, vector<1x8x128xf32>
      %41 = vector.shape_cast %40 : vector<1x8x128xf32> to vector<8x128xf32>
      %42 = arith.extui %29 : vector<16x128xi1> to vector<16x128xi32>
      %43 = arith.sitofp %42 : vector<16x128xi32> to vector<16x128xf32>
      %44 = vector.shape_cast %43 : vector<16x128xf32> to vector<2x8x128xf32>
      %cst_22 = arith.constant dense<0.000000e+00> : vector<8x128xf32>
      %45 = vector.multi_reduction <add>, %44, %cst_22 [0] : vector<2x8x128xf32> to vector<8x128xf32>
      %46 = arith.addf %41, %45 : vector<8x128xf32>
      %c1_23 = arith.constant 1 : index
      %c0_24 = arith.constant 0 : index
      %c0_25 = arith.constant 0 : index
      %47 = vector.load %arg5[%c1_23, %c0_24, %c0_25] : memref<3x8x128xf32, #tpu.memory_space<vmem>>, vector<1x8x128xf32>
      %48 = vector.shape_cast %47 : vector<1x8x128xf32> to vector<8x128xf32>
      %49 = vector.shape_cast %46 : vector<8x128xf32> to vector<1x8x128xf32>
      tpu.vector_store %arg5[%c1_23, %c0_24, %c0_25], %49 {strides = array<i32>} : memref<3x8x128xf32, #tpu.memory_space<vmem>>, vector<1x8x128xf32>,
      %c2 = arith.constant 2 : index
      %c0_26 = arith.constant 0 : index
      %c0_27 = arith.constant 0 : index
      %50 = vector.load %arg5[%c2, %c0_26, %c0_27] : memref<3x8x128xf32, #tpu.memory_space<vmem>>, vector<1x8x128xf32>
      %51 = vector.shape_cast %50 : vector<1x8x128xf32> to vector<8x128xf32>
      %cst_28 = arith.constant 0.000000e+00 : f32
      %52 = vector.broadcast %cst_28 : f32 to vector<16x128xf32>
      %53 = arith.select %26, %9, %52 : vector<16x128xi1>, vector<16x128xf32>
      %54 = vector.shape_cast %53 : vector<16x128xf32> to vector<2x8x128xf32>
      %cst_29 = arith.constant dense<0.000000e+00> : vector<8x128xf32>
      %55 = vector.multi_reduction <add>, %54, %cst_29 [0] : vector<2x8x128xf32> to vector<8x128xf32>
      %56 = arith.addf %51, %55 : vector<8x128xf32>
      %c2_30 = arith.constant 2 : index
      %c0_31 = arith.constant 0 : index
      %c0_32 = arith.constant 0 : index
      %57 = vector.load %arg5[%c2_30, %c0_31, %c0_32] : memref<3x8x128xf32, #tpu.memory_space<vmem>>, vector<1x8x128xf32>
      %58 = vector.shape_cast %57 : vector<1x8x128xf32> to vector<8x128xf32>
      %59 = vector.shape_cast %56 : vector<8x128xf32> to vector<1x8x128xf32>
      tpu.vector_store %arg5[%c2_30, %c0_31, %c0_32], %59 {strides = array<i32>} : memref<3x8x128xf32, #tpu.memory_space<vmem>>, vector<1x8x128xf32>,
    } else {
    }
    return
  }
  func.func @transform_0(%arg0: i32, %arg1: i32) -> (i32, i32) {
    %c1_i32 = arith.constant 1 : i32
    %0 = arith.muli %arg0, %c1_i32 : i32
    %1 = arith.addi %0, %arg1 : i32
    %c0_i32 = arith.constant 0 : i32
    %2 = arith.minsi %1, %c0_i32 : i32
    %c0_i32_0 = arith.constant 0 : i32
    %c0_i32_1 = arith.constant 0 : i32
    return %2, %c0_i32_0 : i32, i32
  }
  func.func @transform_1(%arg0: i32, %arg1: i32) -> (i32, i32) {
    %c1_i32 = arith.constant 1 : i32
    %0 = arith.muli %arg0, %c1_i32 : i32
    %1 = arith.addi %0, %arg1 : i32
    %c0_i32 = arith.constant 0 : i32
    %2 = arith.minsi %1, %c0_i32 : i32
    %c0_i32_0 = arith.constant 0 : i32
    %c0_i32_1 = arith.constant 0 : i32
    return %2, %c0_i32_0 : i32, i32
  }
  func.func @transform_2(%arg0: i32, %arg1: i32) -> (i32, i32) {
    %c1_i32 = arith.constant 1 : i32
    %0 = arith.muli %arg0, %c1_i32 : i32
    %1 = arith.addi %0, %arg1 : i32
    %c0_i32 = arith.constant 0 : i32
    %2 = arith.minsi %1, %c0_i32 : i32
    %c0_i32_0 = arith.constant 0 : i32
    %c0_i32_1 = arith.constant 0 : i32
    return %2, %c0_i32_0 : i32, i32
  }
  func.func @transform_3(%arg0: i32, %arg1: i32) -> (i32, i32, i32) {
    %c0_i32 = arith.constant 0 : i32
    %c0_i32_0 = arith.constant 0 : i32
    %c0_i32_1 = arith.constant 0 : i32
    return %arg0, %c0_i32, %c0_i32_0 : i32, i32, i32
  }
}

</mosaic_0001>

<bundles_post_ra>
// kernel: scaled_mse_loss.1
= control target key start
LH: loop header
LB: loop body
LE: loop exit
PB: predicated region body
PF: predicated region fallthrough
CT: control target
= control target key end

     0   :  { %v234_v10 = vmov 0.0   ;;  %s282_s0 = inlined_call_operand.vmem [shape: f32[16,128], index: 0, kind: input, shape index: {}]   ;;  %s283_s1 = inlined_call_operand.vmem [shape: f32[16,128], index: 1, kind: input, shape index: {}]   ;;  %s284_s2 = inlined_call_operand.vmem [shape: f32[16,128], index: 2, kind: input, shape index: {}]   ;;  %s285_s3 = inlined_call_operand.vmem [shape: f32[3,8,128], index: 3, kind: output, shape index: {}]  }
   0x1   :  { %v117_v0 = vld [vmem:[%s282_s0] sm:$0xff]  ;;  %v118_v1 = vld [vmem:[%s282_s0 + $0x8] sm:$0xff] }
   0x2   :  { %v119_v2 = vld [vmem:[%s283_s1] sm:$0xff]  ;;  %v120_v3 = vld [vmem:[%s283_s1 + $0x8] sm:$0xff] }
   0x3   :  { %v121_v4 = vld [vmem:[%s284_s2] sm:$0xff]  ;;  %v122_v5 = vld [vmem:[%s284_s2 + $0x8] sm:$0xff]  ;;  %v123_v6 = vsub.f32 %v117_v0, %v119_v2  ;;  %v124_v7 = vsub.f32 %v118_v1, %v120_v3 }
   0x4   :  { %vm140_vm0 = vcmp.gt.f32.partialorder %v121_v4, 0.0  ;;  %vm141_vm1 = vcmp.gt.f32.partialorder %v122_v5, 0.0  ;;  %v129_v8 = vand.u32 2147483647, %v121_v4  ;;  %v130_v13 = vand.u32 2147483647, %v122_v5 }
   0x5   :  { %v125_v9 = vmul.f32 %v123_v6, %v121_v4  ;;  %v222_v11 = vsel %vm140_vm0, 1.0, %v234_v10  ;;  %v223_v12 = vsel %vm141_vm1, 1.0, %v234_v10  ;;  %v126_v14 = vmul.f32 %v124_v7, %v122_v5 }
   0x6   :  { %v154_v15 = vadd.f32 %v223_v12, %v222_v11  ;;  %v159_v17 = vadd.f32 %v130_v13, %v129_v8 }
   0x7   :  { %v127_v16 = vmul.f32 %v125_v9, %v123_v6  ;;  %v128_v18 = vmul.f32 %v126_v14, %v124_v7 }
   0x8   :  { %224 = vst [vmem:[%s285_s3 + $0x8] sm:$0xff] %v154_v15 }
   0x9   :  { %v143_v19 = vsel %vm140_vm0, %v127_v16, 0.0  ;;  %v144_v20 = vsel %vm141_vm1, %v128_v18, 0.0  ;;  %226 = vst [vmem:[%s285_s3 + $0x10] sm:$0xff] %v159_v17 }
   0xa   :  { %v145_v21 = vadd.f32 %v144_v20, %v143_v19 }
   0xc   :  { %147 = vst [vmem:[%s285_s3] sm:$0xff] %v145_v21 }

</bundles_post_ra>
